<compile_context>
chip_gen: v5e
topology: v5e:2x2
jax: 0.10.0
libtpu: 0.0.40
codegen_flags: <defaults>
</compile_context>

<pallas_src>
import functools

import jax
import jax.numpy as jnp
from jax.experimental import pallas as pl
from jax.experimental.pallas import tpu as pltpu

HIDDEN = 128
FUSED_HIDDEN = 2 * HIDDEN      # value hidden | policy hidden
OUT_LANES = 128                # lane-dense output slab width


def _round_up(x, m):
    return (x + m - 1) // m * m


def _sil_kernel(x_ref, w1_ref, b1_ref, w2_ref, b2_ref, w3_ref, b3_ref, out_ref):
    """Fused forward for both heads on one batch tile: 3 MXU pushes total."""
    x = x_ref[...]
    h = jnp.dot(x, w1_ref[...], preferred_element_type=jnp.float32) + b1_ref[...]
    h = jnp.maximum(h, 0.0)
    h = jnp.dot(h, w2_ref[...], preferred_element_type=jnp.float32) + b2_ref[...]
    h = jnp.maximum(h, 0.0)
    out = jnp.dot(h, w3_ref[...], preferred_element_type=jnp.float32) + b3_ref[...]
    out_ref[...] = out.astype(out_ref.dtype)


@functools.partial(jax.jit, static_argnames=("action_dim", "batch_tile"))
def sil_forward(state, fused, *, action_dim, batch_tile=128):
    """state: (B, input_dim) f32.  fused: dict of packed weights (see pack_params).

    Returns (value: (B, 1), action_logits: (B, action_dim)).
    """
    B, input_dim = state.shape

    # Batch tiling: pad B up so the grid divides evenly; keep tile a multiple of 8.
    bt = min(batch_tile, _round_up(B, 8))
    b_pad = _round_up(B, bt)
    if b_pad != B:
        state = jnp.pad(state, ((0, b_pad - B), (0, 0)))
    grid = (b_pad // bt,)

    w1, b1 = fused["w1"], fused["b1"]
    w2, b2 = fused["w2"], fused["b2"]
    w3, b3 = fused["w3"], fused["b3"]

    def const_spec(a):
        # Weights/biases: full-array block, constant index -> stays resident in VMEM.
        return pl.BlockSpec(a.shape, lambda i: (0,) * a.ndim)

    flops = 2 * b_pad * (input_dim * FUSED_HIDDEN
                         + FUSED_HIDDEN * FUSED_HIDDEN
                         + FUSED_HIDDEN * OUT_LANES)
    bytes_accessed = 4 * (b_pad * input_dim
                          + w1.size + b1.size + w2.size + b2.size + w3.size + b3.size
                          + b_pad * OUT_LANES)

    out = pl.pallas_call(
        _sil_kernel,
        out_shape=jax.ShapeDtypeStruct((b_pad, OUT_LANES), jnp.float32),
        grid=grid,
        in_specs=[
            pl.BlockSpec((bt, input_dim), lambda i: (i, 0)),  # x: tiled over batch
            const_spec(w1), const_spec(b1),
            const_spec(w2), const_spec(b2),
            const_spec(w3), const_spec(b3),
        ],
        out_specs=pl.BlockSpec((bt, OUT_LANES), lambda i: (i, 0)),
        compiler_params=pltpu.CompilerParams(
            dimension_semantics=("parallel",),
        ),
        cost_estimate=pl.CostEstimate(
            flops=flops, transcendentals=0, bytes_accessed=bytes_accessed),
    )(state, w1, b1, w2, b2, w3, b3)

    value = out[:B, 0:1]
    logits = out[:B, 1:1 + action_dim]
    return value, logits


def init_params(key, input_dim, action_dim, hidden=HIDDEN):
    """Deterministic synthetic init (PyTorch-Linear-style uniform), weights as (in, out)."""
    keys = jax.random.split(key, 12)

    def linear(kw, kb, fan_in, fan_out):
        scale = 1.0 / jnp.sqrt(jnp.float32(fan_in))
        w = jax.random.uniform(kw, (fan_in, fan_out), jnp.float32, -scale, scale)
        b = jax.random.uniform(kb, (1, fan_out), jnp.float32, -scale, scale)
        return w, b

    p = {}
    p["vw1"], p["vb1"] = linear(keys[0], keys[1], input_dim, hidden)
    p["vw2"], p["vb2"] = linear(keys[2], keys[3], hidden, hidden)
    p["vw3"], p["vb3"] = linear(keys[4], keys[5], hidden, 1)
    p["pw1"], p["pb1"] = linear(keys[6], keys[7], input_dim, hidden)
    p["pw2"], p["pb2"] = linear(keys[8], keys[9], hidden, hidden)
    p["pw3"], p["pb3"] = linear(keys[10], keys[11], hidden, action_dim)
    return p


def pack_params(p, action_dim, hidden=HIDDEN):
    """Pack per-head params into the fused / lane-dense layout used by the kernel."""
    assert 1 + action_dim <= OUT_LANES, "value + logits must fit one 128-lane slab"

    # Layer 1: side-by-side concat -> (input_dim, 256).
    w1 = jnp.concatenate([p["vw1"], p["pw1"]], axis=1)
    b1 = jnp.concatenate([p["vb1"], p["pb1"]], axis=1)

    # Layer 2: block-diagonal -> (256, 256) so the heads stay independent.
    w2 = jnp.zeros((2 * hidden, 2 * hidden), jnp.float32)
    w2 = w2.at[:hidden, :hidden].set(p["vw2"])
    w2 = w2.at[hidden:, hidden:].set(p["pw2"])
    b2 = jnp.concatenate([p["vb2"], p["pb2"]], axis=1)

    # Layer 3: (256, 128) lane-dense output slab.
    #   lane 0            <- value head
    #   lanes 1..action_dim <- policy head
    #   remaining lanes   <- zero padding (never read back)
    w3 = jnp.zeros((2 * hidden, OUT_LANES), jnp.float32)
    w3 = w3.at[:hidden, 0:1].set(p["vw3"])
    w3 = w3.at[hidden:, 1:1 + action_dim].set(p["pw3"])
    b3 = jnp.zeros((1, OUT_LANES), jnp.float32)
    b3 = b3.at[:, 0:1].set(p["vb3"])
    b3 = b3.at[:, 1:1 + action_dim].set(p["pb3"])

    return {"w1": w1, "b1": b1, "w2": w2, "b2": b2, "w3": w3, "b3": b3}


def sil_reference(state, p):
    """Pure-JAX reference of the original (unfused) forward pass."""
    h = jnp.maximum(state @ p["vw1"] + p["vb1"], 0.0)
    h = jnp.maximum(h @ p["vw2"] + p["vb2"], 0.0)
    value = h @ p["vw3"] + p["vb3"]
    g = jnp.maximum(state @ p["pw1"] + p["pb1"], 0.0)
    g = jnp.maximum(g @ p["pw2"] + p["pb2"], 0.0)
    logits = g @ p["pw3"] + p["pb3"]
    return value, logits


if __name__ == "__main__":
    input_dim = 32
    action_dim = 8
    batch = 256          # realistic batch so the batch grid actually pipelines

    key = jax.random.PRNGKey(0)
    k_state, k_params = jax.random.split(key)
    state = jax.random.normal(k_state, (batch, input_dim), jnp.float32)
    params = init_params(k_params, input_dim, action_dim)
    fused = pack_params(params, action_dim)

    value, logits = sil_forward(state, fused, action_dim=action_dim, batch_tile=128)
    jax.block_until_ready((value, logits))

    # Also exercise a non-tile-multiple / tiny batch path (padding branch).
    v_small, l_small = sil_forward(state[:8], fused, action_dim=action_dim, batch_tile=128)
    jax.block_until_ready((v_small, l_small))

    value_ref, logits_ref = sil_reference(state, params)
    assert value.shape == (batch, 1) and logits.shape == (batch, action_dim)
    assert v_small.shape == (8, 1) and l_small.shape == (8, action_dim)
    assert jnp.allclose(value, value_ref, atol=1e-4, rtol=1e-4)
    assert jnp.allclose(logits, logits_ref, atol=1e-4, rtol=1e-4)
    assert jnp.allclose(v_small, value_ref[:8], atol=1e-4, rtol=1e-4)
    assert jnp.allclose(l_small, logits_ref[:8], atol=1e-4, rtol=1e-4)

    print("KERNEL_OK")
</pallas_src>

<mosaic_0001>
module attributes {stable_mosaic.version = 11 : i64} {
  func.func @_sil_kernel(%arg0: i32, %arg1: memref<128x32xf32, #tpu.memory_space<vmem>>, %arg2: memref<32x256xf32, #tpu.memory_space<vmem>>, %arg3: memref<1x256xf32, #tpu.memory_space<vmem>>, %arg4: memref<256x256xf32, #tpu.memory_space<vmem>>, %arg5: memref<1x256xf32, #tpu.memory_space<vmem>>, %arg6: memref<256x128xf32, #tpu.memory_space<vmem>>, %arg7: memref<1x128xf32, #tpu.memory_space<vmem>>, %arg8: memref<128x128xf32, #tpu.memory_space<vmem>>) attributes {dimension_semantics = [#tpu.dimension_semantics<parallel>], iteration_bounds = array<i64: 2>, scalar_prefetch = 0 : i64, scratch_operands = 0 : i64, tpu.core_type = #tpu.core_type<tc>, window_params = [{transform_indices = @transform_0, window_bounds = array<i64: 128, 32>}, {pipeline_mode = #tpu.pipeline_mode<synchronous>, transform_indices = @transform_1, window_bounds = array<i64: 32, 256>}, {pipeline_mode = #tpu.pipeline_mode<synchronous>, transform_indices = @transform_2, window_bounds = array<i64: 1, 256>}, {pipeline_mode = #tpu.pipeline_mode<synchronous>, transform_indices = @transform_3, window_bounds = array<i64: 256, 256>}, {pipeline_mode = #tpu.pipeline_mode<synchronous>, transform_indices = @transform_4, window_bounds = array<i64: 1, 256>}, {pipeline_mode = #tpu.pipeline_mode<synchronous>, transform_indices = @transform_5, window_bounds = array<i64: 256, 128>}, {pipeline_mode = #tpu.pipeline_mode<synchronous>, transform_indices = @transform_6, window_bounds = array<i64: 1, 128>}, {transform_indices = @transform_7, window_bounds = array<i64: 128, 128>}]} {
    %c0 = arith.constant 0 : index
    %c0_0 = arith.constant 0 : index
    %0 = vector.load %arg1[%c0, %c0_0] : memref<128x32xf32, #tpu.memory_space<vmem>>, vector<128x32xf32>
    %c0_1 = arith.constant 0 : index
    %c0_2 = arith.constant 0 : index
    %1 = vector.load %arg2[%c0_1, %c0_2] : memref<32x256xf32, #tpu.memory_space<vmem>>, vector<32x256xf32>
    %cst = arith.constant dense<0.000000e+00> : vector<128x256xf32>
    %2 = tpu.matmul %0, %1, %cst {dimension_numbers = #tpu.dot_dimension_numbers<[1], [0], [0], [1], [0, 0, 1, 1], [], []>} : vector<128x32xf32>, vector<32x256xf32>, vector<128x256xf32> -> vector<128x256xf32>
    %c0_3 = arith.constant 0 : index
    %c0_4 = arith.constant 0 : index
    %3 = vector.load %arg3[%c0_3, %c0_4] : memref<1x256xf32, #tpu.memory_space<vmem>>, vector<1x256xf32>
    %4 = vector.broadcast %3 : vector<1x256xf32> to vector<128x256xf32>
    %5 = arith.addf %2, %4 : vector<128x256xf32>
    %cst_5 = arith.constant 0.000000e+00 : f32
    %6 = vector.broadcast %cst_5 : f32 to vector<128x256xf32>
    %7 = arith.maximumf %5, %6 : vector<128x256xf32>
    %c0_6 = arith.constant 0 : index
    %c0_7 = arith.constant 0 : index
    %8 = vector.load %arg4[%c0_6, %c0_7] : memref<256x256xf32, #tpu.memory_space<vmem>>, vector<256x256xf32>
    %cst_8 = arith.constant dense<0.000000e+00> : vector<128x256xf32>
    %9 = tpu.matmul %7, %8, %cst_8 {dimension_numbers = #tpu.dot_dimension_numbers<[1], [0], [0], [1], [0, 0, 1, 1], [], []>} : vector<128x256xf32>, vector<256x256xf32>, vector<128x256xf32> -> vector<128x256xf32>
    %c0_9 = arith.constant 0 : index
    %c0_10 = arith.constant 0 : index
    %10 = vector.load %arg5[%c0_9, %c0_10] : memref<1x256xf32, #tpu.memory_space<vmem>>, vector<1x256xf32>
    %11 = vector.broadcast %10 : vector<1x256xf32> to vector<128x256xf32>
    %12 = arith.addf %9, %11 : vector<128x256xf32>
    %cst_11 = arith.constant 0.000000e+00 : f32
    %13 = vector.broadcast %cst_11 : f32 to vector<128x256xf32>
    %14 = arith.maximumf %12, %13 : vector<128x256xf32>
    %c0_12 = arith.constant 0 : index
    %c0_13 = arith.constant 0 : index
    %15 = vector.load %arg6[%c0_12, %c0_13] : memref<256x128xf32, #tpu.memory_space<vmem>>, vector<256x128xf32>
    %cst_14 = arith.constant dense<0.000000e+00> : vector<128x128xf32>
    %16 = tpu.matmul %14, %15, %cst_14 {dimension_numbers = #tpu.dot_dimension_numbers<[1], [0], [0], [1], [0, 0, 1, 1], [], []>} : vector<128x256xf32>, vector<256x128xf32>, vector<128x128xf32> -> vector<128x128xf32>
    %c0_15 = arith.constant 0 : index
    %c0_16 = arith.constant 0 : index
    %17 = vector.load %arg7[%c0_15, %c0_16] : memref<1x128xf32, #tpu.memory_space<vmem>>, vector<1x128xf32>
    %18 = vector.broadcast %17 : vector<1x128xf32> to vector<128x128xf32>
    %19 = arith.addf %16, %18 : vector<128x128xf32>
    %c0_17 = arith.constant 0 : index
    %c0_18 = arith.constant 0 : index
    %20 = vector.load %arg8[%c0_17, %c0_18] : memref<128x128xf32, #tpu.memory_space<vmem>>, vector<128x128xf32>
    tpu.vector_store %arg8[%c0_17, %c0_18], %19 {strides = array<i32>} : memref<128x128xf32, #tpu.memory_space<vmem>>, vector<128x128xf32>,
    return
  }
  func.func @transform_0(%arg0: i32) -> (i32, i32) {
    %c0_i32 = arith.constant 0 : i32
    %c0_i32_0 = arith.constant 0 : i32
    return %arg0, %c0_i32 : i32, i32
  }
  func.func @transform_1(%arg0: i32) -> (i32, i32) {
    %c0_i32 = arith.constant 0 : i32
    %c0_i32_0 = arith.constant 0 : i32
    %c0_i32_1 = arith.constant 0 : i32
    return %c0_i32, %c0_i32_0 : i32, i32
  }
  func.func @transform_2(%arg0: i32) -> (i32, i32) {
    %c0_i32 = arith.constant 0 : i32
    %c0_i32_0 = arith.constant 0 : i32
    %c0_i32_1 = arith.constant 0 : i32
    return %c0_i32, %c0_i32_0 : i32, i32
  }
  func.func @transform_3(%arg0: i32) -> (i32, i32) {
    %c0_i32 = arith.constant 0 : i32
    %c0_i32_0 = arith.constant 0 : i32
    %c0_i32_1 = arith.constant 0 : i32
    return %c0_i32, %c0_i32_0 : i32, i32
  }
  func.func @transform_4(%arg0: i32) -> (i32, i32) {
    %c0_i32 = arith.constant 0 : i32
    %c0_i32_0 = arith.constant 0 : i32
    %c0_i32_1 = arith.constant 0 : i32
    return %c0_i32, %c0_i32_0 : i32, i32
  }
  func.func @transform_5(%arg0: i32) -> (i32, i32) {
    %c0_i32 = arith.constant 0 : i32
    %c0_i32_0 = arith.constant 0 : i32
    %c0_i32_1 = arith.constant 0 : i32
    return %c0_i32, %c0_i32_0 : i32, i32
  }
  func.func @transform_6(%arg0: i32) -> (i32, i32) {
    %c0_i32 = arith.constant 0 : i32
    %c0_i32_0 = arith.constant 0 : i32
    %c0_i32_1 = arith.constant 0 : i32
    return %c0_i32, %c0_i32_0 : i32, i32
  }
  func.func @transform_7(%arg0: i32) -> (i32, i32) {
    %c0_i32 = arith.constant 0 : i32
    %c0_i32_0 = arith.constant 0 : i32
    return %arg0, %c0_i32 : i32, i32
  }
}

</mosaic_0001>

<bundles_post_ra>
// kernel: sil_forward.1
= control target key start
LH: loop header
LB: loop body
LE: loop exit
PB: predicated region body
PF: predicated region fallthrough
CT: control target
= control target key end

     0   :  { %12 = vsyncpa [#allocation3], 0  ;;  %s1336_s24 = smov 0   ;;  %s1650_s0 = inlined_call_operand.vmem [shape: f32[256,32], index: 0, kind: input, shape index: {}]   ;;  %s1651_s1 = inlined_call_operand.vmem [shape: f32[32,256], index: 1, kind: input, shape index: {}]   ;;  %s1652_s2 = inlined_call_operand.vmem [shape: f32[1,256], index: 2, kind: input, shape index: {}]   ;;  %s1653_s3 = inlined_call_operand.hbm [shape: f32[256,256], index: 3, kind: input, shape index: {}]   ;;  %s1654_s4 = inlined_call_operand.vmem [shape: f32[1,256], index: 4, kind: input, shape index: {}]   ;;  %s1655_s5 = inlined_call_operand.vmem [shape: f32[256,128], index: 5, kind: input, shape index: {}]   ;;  %s1656_s6 = inlined_call_operand.vmem [shape: f32[1,128], index: 6, kind: input, shape index: {}]   ;;  %s1657_s7 = inlined_call_operand.vmem [shape: f32[256,128], index: 7, kind: output, shape index: {}]  }
   0x1 LB: > { %s218_s27 = sshll.u32 %s1653_s3, 4  ;;  %s1152_s28 = sadd.s32 4294967295, %s1291_s24   ;;  %s1291_s24 = sphi %s1336_s24, %s18_s24   ;;  %s219_s27 = int_to_ptr.hbm [resolvable:$true] %s218_s27 }
   0x2   : > { %p1154_p0 = scmp.ge.s32.totalorder %s1291_s24, 1  ;;  %p201_p1 = scmp.lt.s32.totalorder %s1291_s24, 3 }
   0x3   : > { %p1237_p2 = scmp.eq.s32.totalorder %s1152_s28, 0  ;;  %s1293_s29 = smov [#allocation2]  }
   0x4   : > { %p202_p3 = pnand %p1154_p0, %p201_p1  ;;  %s220_s30 = sshll.u32 %s1293_s29, 4  ;;  %s221_s30 = int_to_ptr.vmem [resolvable:$true] %s220_s30 }
   0x5   : > { %s1294_s8 = smov 256   ;;  %s1295_s9 = smov 16  }
   0x6   : > { %p1233_p4 = pneg %p202_p3  ;;  %254 = sbr.rel (%p202_p3) target bundleno = 545 (0x221), region = 48 }
   0x8   : > { %p1234_p5 = pnand %p1237_p2, %p1233_p4 }
   0xa   : > { %1236 = dma.hbm_to_vmem [thread:$0]  (!%p1234_p5), %s219_s27, 8192, %s221_s30, [#allocation3], %s1294_s8, %s1294_s8, %s1295_s9  }
   0xb   : > { %1286 = dma.done.wait (%p1237_p2), [#allocation3], 8192  }
   0xc   : > { %1288 = vsyncadd (%p1237_p2), [#allocation3], 4294959104  ;;  %s1159_s10 = sshll.u32 %s1152_s28, 4  ;;  %v321_v0 = vld [vmem:[%s1651_s1 + $0x30] sm:$0xff]  ;;  %v319_v1 = vld [vmem:[%s1651_s1 + $0x20] sm:$0xff]  ;;  %vm329_vm0 = vcmask 261120  }
   0xd   : > { %p288_p6 = scmp.lt.s32.totalorder %s1159_s10, 31  ;;  %v322_v2 = vld [vmem:[%s1651_s1 + $0x38] sm:$0xff]  ;;  %390 = vmatpush.msra.mxu0 %v321_v0  ;;  %v320_v3 = vld [vmem:[%s1651_s1 + $0x28] sm:$0xff]  ;;  %v317_v4 = vld [vmem:[%s1651_s1 + $0x10] sm:$0xff] }
   0xe   : > { %455 = vmatpush.msra.mxu1 %v322_v2  ;;  %v318_v5 = vld [vmem:[%s1651_s1 + $0x18] sm:$0xff]  ;;  %v315_v6 = vld [vmem:[%s1651_s1] sm:$0xff]  ;;  %v316_v7 = vld [vmem:[%s1651_s1 + $0x8] sm:$0xff] }
   0xf   : > { %s1659_s10 = smov (!%p288_p6, %s1159_s10), 31  ;;  %391 = vmatpush.msra.mxu0 %v319_v1  ;;  %v571_v9 = vld [vmem:[#allocation2 + $0xf8] sm:$0xff]  ;;  %v569_v11 = vld [vmem:[#allocation2 + $0xe8] sm:$0xff]  ;;  %v570_v40 = vld [vmem:[#allocation2 + $0xf0] sm:$0xff] }
  0x10   : > { %s1160_s11 = sshll.u32 %s1659_s10, 3  ;;  %456 = vmatpush.msra.mxu1 %v320_v3  ;;  %v603_v10 = vld [vmem:[#allocation2 + $0x1f8] sm:$0xff]  ;;  %v601_v12 = vld [vmem:[#allocation2 + $0x1e8] sm:$0xff]  ;;  %610 = vmatpush.msra.mxu2 %v570_v40  ;;  %v568_v42 = vld [vmem:[#allocation2 + $0xe0] sm:$0xff] }
  0x11   : > { %s1373_s27 = scalar_lea.vmem %s1650_s0, %s1160_s11  ;;  %392 = vmatpush.msra.mxu0 %v317_v4  ;;  %v567_v13 = vld [vmem:[#allocation2 + $0xd8] sm:$0xff]  ;;  %v565_v15 = vld [vmem:[#allocation2 + $0xc8] sm:$0xff]  ;;  %v602_v43 = vld [vmem:[#allocation2 + $0x1f0] sm:$0xff]  ;;  %s1614_s23 = scalar_lea.vmem %s1657_s7, %s1160_s11 }
  0x12   : > { %457 = vmatpush.msra.mxu1 %v318_v5  ;;  %v299_v8 = vld [vmem:[%s1373_s27] sm:$0xff]  ;;  %v599_v14 = vld [vmem:[#allocation2 + $0x1d8] sm:$0xff]  ;;  %v597_v16 = vld [vmem:[#allocation2 + $0x1c8] sm:$0xff]  ;;  %675 = vmatpush.msra.mxu3 %v602_v43 }
  0x13   : > { %393 = vmatpush.msra.mxu0 %v315_v6  ;;  %v300_v17 = vld [vmem:[%s1373_s27 + $0x8] sm:$0xff]  ;;  %v563_v18 = vld [vmem:[#allocation2 + $0xb8] sm:$0xff]  ;;  %v301_v20 = vld [vmem:[%s1373_s27 + $0x10] sm:$0xff]  ;;  %611 = vmatpush.msra.mxu2 %v568_v42 }
  0x14   : > { %458 = vmatpush.msra.mxu1 %v316_v7  ;;  %1163 = vmatmul.msk.f32.vlgmr.msra.gmra.mxu0 %vm329_vm0, %v299_v8  ;;  %v595_v19 = vld [vmem:[#allocation2 + $0x1b8] sm:$0xff]  ;;  %v561_v21 = vld [vmem:[#allocation2 + $0xa8] sm:$0xff]  ;;  %v303_v26 = vld [vmem:[%s1373_s27 + $0x20] sm:$0xff] }
  0x15   : > { %1179 = vmatmul.msk.f32.vlgmr.msra.gmra.mxu1 %vm329_vm0, %v299_v8  ;;  %740 = vmatpush.msrb.mxu0 %v571_v9  ;;  %v593_v22 = vld [vmem:[#allocation2 + $0x1a8] sm:$0xff]  ;;  %v302_v23 = vld [vmem:[%s1373_s27 + $0x18] sm:$0xff]  ;;  %v305_v32 = vld [vmem:[%s1373_s27 + $0x30] sm:$0xff] }
  0x16   : > { %805 = vmatpush.msrb.mxu1 %v603_v10  ;;  %v559_v24 = vld [vmem:[#allocation2 + $0x98] sm:$0xff]  ;;  %v557_v27 = vld [vmem:[#allocation2 + $0x88] sm:$0xff]  ;;  %v307_v38 = vld [vmem:[%s1373_s27 + $0x40] sm:$0xff] }
  0x17   : > { %741 = vmatpush.msrb.mxu0 %v569_v11  ;;  %v591_v25 = vld [vmem:[#allocation2 + $0x198] sm:$0xff]  ;;  %v589_v28 = vld [vmem:[#allocation2 + $0x188] sm:$0xff]  ;;  %v566_v44 = vld [vmem:[#allocation2 + $0xd0] sm:$0xff] }
  0x18   : > { %806 = vmatpush.msrb.mxu1 %v601_v12  ;;  %v304_v29 = vld [vmem:[%s1373_s27 + $0x28] sm:$0xff]  ;;  %v555_v30 = vld [vmem:[#allocation2 + $0x78] sm:$0xff]  ;;  %v600_v45 = vld [vmem:[#allocation2 + $0x1e0] sm:$0xff]  ;;  %612 = vmatpush.msra.mxu2 %v566_v44 }
  0x19   : > { %742 = vmatpush.msrb.mxu0 %v567_v13  ;;  %v587_v31 = vld [vmem:[#allocation2 + $0x178] sm:$0xff]  ;;  %v553_v33 = vld [vmem:[#allocation2 + $0x68] sm:$0xff]  ;;  %676 = vmatpush.msra.mxu3 %v600_v45  ;;  %v564_v47 = vld [vmem:[#allocation2 + $0xc0] sm:$0xff] }
  0x1a   : > { %807 = vmatpush.msrb.mxu1 %v599_v14  ;;  %v585_v34 = vld [vmem:[#allocation2 + $0x168] sm:$0xff]  ;;  %v306_v35 = vld [vmem:[%s1373_s27 + $0x38] sm:$0xff]  ;;  %v598_v48 = vld [vmem:[#allocation2 + $0x1d0] sm:$0xff]  ;;  %613 = vmatpush.msra.mxu2 %v564_v47 }
  0x1b   : > { %743 = vmatpush.msrb.mxu0 %v565_v15  ;;  %v551_v36 = vld [vmem:[#allocation2 + $0x58] sm:$0xff]  ;;  %v549_v39 = vld [vmem:[#allocation2 + $0x48] sm:$0xff]  ;;  %677 = vmatpush.msra.mxu3 %v598_v48  ;;  %v562_v50 = vld [vmem:[#allocation2 + $0xb0] sm:$0xff] }
  0x1c   : > { %808 = vmatpush.msrb.mxu1 %v597_v16  ;;  %1164 = vmatmul.msk.f32.gmra.mxu0 %vm329_vm0, %v300_v17  ;;  %v583_v37 = vld [vmem:[#allocation2 + $0x158] sm:$0xff]  ;;  %v581_v41 = vld [vmem:[#allocation2 + $0x148] sm:$0xff]  ;;  %v596_v51 = vld [vmem:[#allocation2 + $0x1c0] sm:$0xff] }
  0x1d   : > { %1180 = vmatmul.msk.f32.gmra.mxu1 %vm329_vm0, %v300_v17  ;;  %744 = vmatpush.msrb.mxu0 %v563_v18  ;;  %v308_v46 = vld [vmem:[%s1373_s27 + $0x48] sm:$0xff]  ;;  %v547_v49 = vld [vmem:[#allocation2 + $0x38] sm:$0xff]  ;;  %v560_v53 = vld [vmem:[#allocation2 + $0xa0] sm:$0xff] }
  0x1e   : > { %809 = vmatpush.msrb.mxu1 %v595_v19  ;;  %v579_v52 = vld [vmem:[#allocation2 + $0x138] sm:$0xff]  ;;  %v594_v54 = vld [vmem:[#allocation2 + $0x1b0] sm:$0xff]  ;;  %614 = vmatpush.msra.mxu2 %v562_v50  ;;  %v592_v56 = vld [vmem:[#allocation2 + $0x1a0] sm:$0xff] }
  0x1f   : > { %745 = vmatpush.msrb.mxu0 %v561_v21  ;;  %678 = vmatpush.msra.mxu3 %v596_v51  ;;  %v558_v55 = vld [vmem:[#allocation2 + $0x90] sm:$0xff]  ;;  %v556_v58 = vld [vmem:[#allocation2 + $0x80] sm:$0xff]  ;;  %v545_v60 = vld [vmem:[#allocation2 + $0x28] sm:$0xff] }
  0x20   : > { %810 = vmatpush.msrb.mxu1 %v593_v22  ;;  %v309_v57 = vld [vmem:[%s1373_s27 + $0x50] sm:$0xff]  ;;  %615 = vmatpush.msra.mxu2 %v560_v53  ;;  %v588_v62 = vld [vmem:[#allocation2 + $0x180] sm:$0xff]  ;;  %v577_v63 = vld [vmem:[#allocation2 + $0x128] sm:$0xff] }
  0x21   : > { %746 = vmatpush.msrb.mxu0 %v559_v24  ;;  %679 = vmatpush.msra.mxu3 %v594_v54  ;;  %v590_v59 = vld [vmem:[#allocation2 + $0x190] sm:$0xff]  ;;  %v552_v0 = vld [vmem:[#allocation2 + $0x60] sm:$0xff]  ;;  %v310_v4 = vld [vmem:[%s1373_s27 + $0x58] sm:$0xff] }
  0x22   : > { %811 = vmatpush.msrb.mxu1 %v591_v25  ;;  %616 = vmatpush.msra.mxu2 %v558_v55  ;;  %v554_v61 = vld [vmem:[#allocation2 + $0x70] sm:$0xff]  ;;  %v584_v3 = vld [vmem:[#allocation2 + $0x160] sm:$0xff]  ;;  %v543_v7 = vld [vmem:[#allocation2 + $0x18] sm:$0xff] }
  0x23   : > { %747 = vmatpush.msrb.mxu0 %v557_v27  ;;  %680 = vmatpush.msra.mxu3 %v592_v56  ;;  %v586_v1 = vld [vmem:[#allocation2 + $0x170] sm:$0xff]  ;;  %v548_v5 = vld [vmem:[#allocation2 + $0x40] sm:$0xff]  ;;  %v575_v10 = vld [vmem:[#allocation2 + $0x118] sm:$0xff] }
  0x24   : > { %1165 = vmatmul.msk.f32.gmra.mxu0 %vm329_vm0, %v301_v20  ;;  %812 = vmatpush.msrb.mxu1 %v589_v28  ;;  %v550_v2 = vld [vmem:[#allocation2 + $0x50] sm:$0xff]  ;;  %v580_v9 = vld [vmem:[#allocation2 + $0x140] sm:$0xff]  ;;  %v541_v18 = vld [vmem:[#allocation2 + $0x8] sm:$0xff] }
  0x25   : > { %1181 = vmatmul.msk.f32.gmra.mxu1 %vm329_vm0, %v301_v20  ;;  %748 = vmatpush.msrb.mxu0 %v555_v30  ;;  %v582_v6 = vld [vmem:[#allocation2 + $0x150] sm:$0xff]  ;;  %v544_v11 = vld [vmem:[#allocation2 + $0x20] sm:$0xff]  ;;  %v573_v20 = vld [vmem:[#allocation2 + $0x108] sm:$0xff] }
  0x26   : > { %813 = vmatpush.msrb.mxu1 %v587_v31  ;;  %617 = vmatpush.msra.mxu2 %v556_v58  ;;  %v546_v8 = vld [vmem:[#allocation2 + $0x30] sm:$0xff]  ;;  %v311_v13 = vld [vmem:[%s1373_s27 + $0x60] sm:$0xff]  ;;  %v312_v21 = vld [vmem:[%s1373_s27 + $0x68] sm:$0xff] }
  0x27   : > { %749 = vmatpush.msrb.mxu0 %v553_v33  ;;  %681 = vmatpush.msra.mxu3 %v590_v59  ;;  %v578_v12 = vld [vmem:[#allocation2 + $0x130] sm:$0xff]  ;;  %v576_v15 = vld [vmem:[#allocation2 + $0x120] sm:$0xff]  ;;  %v314_v24 = vld [vmem:[%s1373_s27 + $0x78] sm:$0xff] }
  0x28   : > { %814 = vmatpush.msrb.mxu1 %v585_v34  ;;  %618 = vmatpush.msra.mxu2 %v554_v61  ;;  %v542_v14 = vld [vmem:[#allocation2 + $0x10] sm:$0xff]  ;;  %v540_v16 = vld [vmem:[#allocation2] sm:$0xff]  ;;  %v933_v25 = vld [vmem:[%s1655_s5 + $0xf8] sm:$0xff] }
  0x29   : > { %750 = vmatpush.msrb.mxu0 %v551_v36  ;;  %682 = vmatpush.msra.mxu3 %v588_v62  ;;  %v574_v17 = vld [vmem:[#allocation2 + $0x110] sm:$0xff]  ;;  %v572_v19 = vld [vmem:[#allocation2 + $0x100] sm:$0xff]  ;;  %v931_v42 = vld [vmem:[%s1655_s5 + $0xe8] sm:$0xff] }
  0x2a   : > { %815 = vmatpush.msrb.mxu1 %v583_v37  ;;  %619 = vmatpush.msra.mxu2 %v552_v0  ;;  %v313_v22 = vld [vmem:[%s1373_s27 + $0x70] sm:$0xff]  ;;  %v915_v37 = vld [vmem:[%s1655_s5 + $0x68] sm:$0xff]  ;;  %v914_v45 = vld [vmem:[%s1655_s5 + $0x60] sm:$0xff] }
  0x2b   : > { %751 = vmatpush.msrb.mxu0 %v549_v39  ;;  %683 = vmatpush.msra.mxu3 %v586_v1  ;;  %v932_v34 = vld [vmem:[%s1655_s5 + $0xf0] sm:$0xff]  ;;  %v930_v50 = vld [vmem:[%s1655_s5 + $0xe0] sm:$0xff]  ;;  %v913_v53 = vld [vmem:[%s1655_s5 + $0x58] sm:$0xff] }
  0x2c   : > { %1166 = vmatmul.msk.f32.gmra.mxu0 %vm329_vm0, %v302_v23  ;;  %816 = vmatpush.msrb.mxu1 %v581_v41  ;;  %v929_v58 = vld [vmem:[%s1655_s5 + $0xd8] sm:$0xff]  ;;  %v912_v61 = vld [vmem:[%s1655_s5 + $0x50] sm:$0xff] }
  0x2d   : > { %1182 = vmatmul.msk.f32.gmra.mxu1 %vm329_vm0, %v302_v23  ;;  %752 = vmatpush.msrb.mxu0 %v547_v49  ;;  %v917_v23 = vld [vmem:[%s1655_s5 + $0x78] sm:$0xff] }
  0x2e   : > { %817 = vmatpush.msrb.mxu1 %v579_v52  ;;  %620 = vmatpush.msra.mxu2 %v550_v2  ;;  %v928_v2 = vld [vmem:[%s1655_s5 + $0xd0] sm:$0xff] }
  0x2f   : > { %753 = vmatpush.msrb.mxu0 %v545_v60  ;;  %684 = vmatpush.msra.mxu3 %v584_v3 }
  0x30   : > { %818 = vmatpush.msrb.mxu1 %v577_v63  ;;  %621 = vmatpush.msra.mxu2 %v548_v5  ;;  %v911_v5 = vld [vmem:[%s1655_s5 + $0x48] sm:$0xff] }
  0x31   : > { %685 = vmatpush.msra.mxu3 %v582_v6  ;;  %754 = vmatpush.msrb.mxu0 %v543_v7 }
  0x32   : > { %819 = vmatpush.msrb.mxu1 %v575_v10  ;;  %622 = vmatpush.msra.mxu2 %v546_v8 }
  0x33   : > { %686 = vmatpush.msra.mxu3 %v580_v9  ;;  %755 = vmatpush.msrb.mxu0 %v541_v18 }
  0x34   : > { %1167 = vmatmul.msk.f32.gmra.mxu0 %vm329_vm0, %v303_v26  ;;  %623 = vmatpush.msra.mxu2 %v544_v11 }
  0x35   : > { %1183 = vmatmul.msk.f32.gmra.mxu1 %vm329_vm0, %v303_v26  ;;  %687 = vmatpush.msra.mxu3 %v578_v12  ;;  %v323_v26 = vld [vmem:[%s1652_s2] sm:$0x3]  ;;  %v927_v12 = vld [vmem:[%s1655_s5 + $0xc8] sm:$0xff] }
  0x36   : > { %624 = vmatpush.msra.mxu2 %v542_v14  ;;  %820 = vmatpush.msrb.mxu1 %v573_v20  ;;  %v1438_v27 = vperm.slane %v323_v26, 0  ;;  %v1440_v28 = vperm.slane %v323_v26, 1  ;;  %v926_v20 = vld [vmem:[%s1655_s5 + $0xc0] sm:$0xff] }
  0x37   : > { %688 = vmatpush.msra.mxu3 %v576_v15  ;;  %938 = vmatpush.msra.mxu0 %v917_v23 }
  0x38   : > { %625 = vmatpush.msra.mxu2 %v540_v16  ;;  %1003 = vmatpush.msra.mxu1 %v933_v25 }
  0x39   : > { %689 = vmatpush.msra.mxu3 %v574_v17 }
  0x3a   : > { %1197 = vmatpush.msrb.mxu2 %v917_v23  ;;  %1004 = vmatpush.msra.mxu1 %v932_v34 }
  0x3b   : > { %690 = vmatpush.msra.mxu3 %v572_v19 }
  0x3c   : > { %1168 = vmatmul.msk.f32.gmra.mxu0 %vm329_vm0, %v304_v29  ;;  %1005 = vmatpush.msra.mxu1 %v931_v42 }
  0x3d   : > { %1184 = vmatmul.msk.f32.gmra.mxu1 %vm329_vm0, %v304_v29  ;;  %1213 = vmatpush.msrb.mxu3 %v933_v25  ;;  %v916_v29 = vld [vmem:[%s1655_s5 + $0x70] sm:$0xff] }
  0x3e   : > { %1198 = vmatpush.msrb.mxu2 %v916_v29  ;;  %939 = vmatpush.msra.mxu0 %v916_v29 }
  0x3f   : > { %1214 = vmatpush.msrb.mxu3 %v932_v34  ;;  %1006 = vmatpush.msra.mxu1 %v930_v50 }
  0x40   : > { %1199 = vmatpush.msrb.mxu2 %v915_v37  ;;  %940 = vmatpush.msra.mxu0 %v915_v37 }
  0x41   : > { %1215 = vmatpush.msrb.mxu3 %v931_v42  ;;  %1007 = vmatpush.msra.mxu1 %v929_v58 }
  0x42   : > { %1200 = vmatpush.msrb.mxu2 %v914_v45  ;;  %941 = vmatpush.msra.mxu0 %v914_v45 }
  0x43   : > { %1216 = vmatpush.msrb.mxu3 %v930_v50  ;;  %1008 = vmatpush.msra.mxu1 %v928_v2 }
  0x44   : > { %1169 = vmatmul.msk.f32.gmra.mxu0 %vm329_vm0, %v305_v32  ;;  %1201 = vmatpush.msrb.mxu2 %v913_v53 }
  0x45   : > { %1185 = vmatmul.msk.f32.gmra.mxu1 %vm329_vm0, %v305_v32  ;;  %942 = vmatpush.msra.mxu0 %v913_v53 }
  0x46   : > { %1217 = vmatpush.msrb.mxu3 %v929_v58  ;;  %1202 = vmatpush.msrb.mxu2 %v912_v61 }
  0x47   : > { %943 = vmatpush.msra.mxu0 %v912_v61  ;;  %1009 = vmatpush.msra.mxu1 %v927_v12 }
  0x48   : > { %1218 = vmatpush.msrb.mxu3 %v928_v2  ;;  %1203 = vmatpush.msrb.mxu2 %v911_v5 }
  0x49   : > { %944 = vmatpush.msra.mxu0 %v911_v5  ;;  %1010 = vmatpush.msra.mxu1 %v926_v20 }
  0x4a   : > { %1219 = vmatpush.msrb.mxu3 %v927_v12 }
  0x4c   : > { %1170 = vmatmul.msk.f32.gmra.mxu0 %vm329_vm0, %v306_v35  ;;  %1220 = vmatpush.msrb.mxu3 %v926_v20 }
  0x4d   : > { %1186 = vmatmul.msk.f32.gmra.mxu1 %vm329_vm0, %v306_v35 }
  0x54   : > { %1171 = vmatmul.msk.f32.gmra.mxu0 %vm329_vm0, %v307_v38 }
  0x55   : > { %1187 = vmatmul.msk.f32.gmra.mxu1 %vm329_vm0, %v307_v38 }
  0x5c   : > { %1172 = vmatmul.msk.f32.gmra.mxu0 %vm329_vm0, %v308_v46 }
  0x5d   : > { %1188 = vmatmul.msk.f32.gmra.mxu1 %vm329_vm0, %v308_v46 }
  0x64   : > { %1173 = vmatmul.msk.f32.gmra.mxu0 %vm329_vm0, %v309_v57 }
  0x65   : > { %1189 = vmatmul.msk.f32.gmra.mxu1 %vm329_vm0, %v309_v57 }
  0x6c   : > { %1174 = vmatmul.msk.f32.gmra.mxu0 %vm329_vm0, %v310_v4 }
  0x6d   : > { %1190 = vmatmul.msk.f32.gmra.mxu1 %vm329_vm0, %v310_v4 }
  0x74   : > { %1175 = vmatmul.msk.f32.gmra.mxu0 %vm329_vm0, %v311_v13 }
  0x75   : > { %1191 = vmatmul.msk.f32.gmra.mxu1 %vm329_vm0, %v311_v13  ;;  %v910_v13 = vld [vmem:[%s1655_s5 + $0x40] sm:$0xff] }
  0x76   : > { %1204 = vmatpush.msrb.mxu2 %v910_v13  ;;  %945 = vmatpush.msra.mxu0 %v910_v13 }
  0x7c   : > { %1176 = vmatmul.msk.f32.gmra.mxu0 %vm329_vm0, %v312_v21 }
  0x7d   : > { %1192 = vmatmul.msk.f32.gmra.mxu1 %vm329_vm0, %v312_v21  ;;  %v909_v21 = vld [vmem:[%s1655_s5 + $0x38] sm:$0xff] }
  0x7e   : > { %1205 = vmatpush.msrb.mxu2 %v909_v21  ;;  %946 = vmatpush.msra.mxu0 %v909_v21 }
  0x84   : > { %1177 = vmatmul.msk.f32.gmra.mxu0 %vm329_vm0, %v313_v22 }
  0x85   : > { %1193 = vmatmul.msk.f32.gmra.mxu1 %vm329_vm0, %v313_v22 }
  0x8c   : > { %1178 = vmatmul.msk.f32.gmra.mxu0 %vm329_vm0, %v314_v24 }
  0x8d   : > { %1194 = vmatmul.msk.f32.gmra.mxu1 %vm329_vm0, %v314_v24 }
  0x91   : > { %v395_v30 = vpop.f32.mrf.mxu0 }
  0x92   : > { %v460_v31 = vpop.f32.mrf.mxu1  ;;  %v396_v32 = vadd.f32 %v395_v30, %v1438_v27  ;;  %v925_v30 = vld [vmem:[%s1655_s5 + $0xb8] sm:$0xff] }
  0x93   : > { %v461_v33 = vadd.f32 %v460_v31, %v1440_v28  ;;  %1221 = vmatpush.msrb.mxu3 %v925_v30  ;;  %1011 = vmatpush.msra.mxu1 %v925_v30  ;;  %v908_v31 = vld [vmem:[%s1655_s5 + $0x30] sm:$0xff] }
  0x94   : > { %v508_v35 = vmax.f32 %v396_v32, 0.0  ;;  %1206 = vmatpush.msrb.mxu2 %v908_v31  ;;  %947 = vmatpush.msra.mxu0 %v908_v31  ;;  %v604_v31 = vld [vmem:[%s1654_s4] sm:$0x3] }
  0x95   : > { %v509_v36 = vmax.f32 %v461_v33, 0.0 }
  0x96   : > { %626 = vmatmul.f32.vlgmr.msra.gmra.mxu2 %v508_v35  ;;  %756 = vmatmul.f32.vlgmr.msrb.gmra.mxu0 %v508_v35 }
  0x97   : > { %691 = vmatmul.f32.vlgmr.msra.gmra.mxu3 %v509_v36  ;;  %821 = vmatmul.f32.vlgmr.msrb.gmra.mxu1 %v509_v36 }
  0x99   : > { %v398_v38 = vpop.f32.mrf.mxu0 }
  0x9a   : > { %v463_v39 = vpop.f32.mrf.mxu1  ;;  %v399_v40 = vadd.f32 %v398_v38, %v1438_v27  ;;  %v924_v38 = vld [vmem:[%s1655_s5 + $0xb0] sm:$0xff] }
  0x9b   : > { %v464_v41 = vadd.f32 %v463_v39, %v1440_v28  ;;  %1222 = vmatpush.msrb.mxu3 %v924_v38  ;;  %1012 = vmatpush.msra.mxu1 %v924_v38  ;;  %v907_v39 = vld [vmem:[%s1655_s5 + $0x28] sm:$0xff] }
  0x9c   : > { %v510_v43 = vmax.f32 %v399_v40, 0.0  ;;  %1207 = vmatpush.msrb.mxu2 %v907_v39  ;;  %948 = vmatpush.msra.mxu0 %v907_v39 }
  0x9d   : > { %v511_v44 = vmax.f32 %v464_v41, 0.0 }
  0x9e   : > { %629 = vmatmul.f32.gmra.mxu2 %v510_v43  ;;  %759 = vmatmul.f32.gmra.mxu0 %v510_v43 }
  0x9f   : > { %694 = vmatmul.f32.gmra.mxu3 %v511_v44  ;;  %824 = vmatmul.f32.gmra.mxu1 %v511_v44 }
  0xa1   : > { %v401_v46 = vpop.f32.mrf.mxu0 }
  0xa2   : > { %v466_v47 = vpop.f32.mrf.mxu1  ;;  %v402_v48 = vadd.f32 %v401_v46, %v1438_v27  ;;  %v923_v46 = vld [vmem:[%s1655_s5 + $0xa8] sm:$0xff] }
  0xa3   : > { %v467_v49 = vadd.f32 %v466_v47, %v1440_v28  ;;  %1223 = vmatpush.msrb.mxu3 %v923_v46  ;;  %1013 = vmatpush.msra.mxu1 %v923_v46  ;;  %v906_v47 = vld [vmem:[%s1655_s5 + $0x20] sm:$0xff] }
  0xa4   : > { %v512_v51 = vmax.f32 %v402_v48, 0.0  ;;  %1208 = vmatpush.msrb.mxu2 %v906_v47  ;;  %949 = vmatpush.msra.mxu0 %v906_v47 }
  0xa5   : > { %v513_v52 = vmax.f32 %v467_v49, 0.0 }
  0xa6   : > { %632 = vmatmul.f32.gmra.mxu2 %v512_v51  ;;  %762 = vmatmul.f32.gmra.mxu0 %v512_v51 }
  0xa7   : > { %697 = vmatmul.f32.gmra.mxu3 %v513_v52  ;;  %827 = vmatmul.f32.gmra.mxu1 %v513_v52 }
  0xa9   : > { %v404_v54 = vpop.f32.mrf.mxu0 }
  0xaa   : > { %v469_v55 = vpop.f32.mrf.mxu1  ;;  %v405_v56 = vadd.f32 %v404_v54, %v1438_v27  ;;  %v922_v54 = vld [vmem:[%s1655_s5 + $0xa0] sm:$0xff] }
  0xab   : > { %v470_v57 = vadd.f32 %v469_v55, %v1440_v28  ;;  %1224 = vmatpush.msrb.mxu3 %v922_v54  ;;  %1014 = vmatpush.msra.mxu1 %v922_v54  ;;  %v905_v55 = vld [vmem:[%s1655_s5 + $0x18] sm:$0xff] }
  0xac   : > { %v514_v59 = vmax.f32 %v405_v56, 0.0  ;;  %1209 = vmatpush.msrb.mxu2 %v905_v55  ;;  %950 = vmatpush.msra.mxu0 %v905_v55 }
  0xad   : > { %v515_v60 = vmax.f32 %v470_v57, 0.0 }
  0xae   : > { %635 = vmatmul.f32.gmra.mxu2 %v514_v59  ;;  %765 = vmatmul.f32.gmra.mxu0 %v514_v59 }
  0xaf   : > { %700 = vmatmul.f32.gmra.mxu3 %v515_v60  ;;  %830 = vmatmul.f32.gmra.mxu1 %v515_v60 }
  0xb1   : > { %v407_v62 = vpop.f32.mrf.mxu0 }
  0xb2   : > { %v472_v63 = vpop.f32.mrf.mxu1  ;;  %v408_v0 = vadd.f32 %v407_v62, %v1438_v27  ;;  %v921_v62 = vld [vmem:[%s1655_s5 + $0x98] sm:$0xff] }
  0xb3   : > { %v473_v1 = vadd.f32 %v472_v63, %v1440_v28  ;;  %1225 = vmatpush.msrb.mxu3 %v921_v62  ;;  %1015 = vmatpush.msra.mxu1 %v921_v62  ;;  %v904_v63 = vld [vmem:[%s1655_s5 + $0x10] sm:$0xff] }
  0xb4   : > { %v516_v3 = vmax.f32 %v408_v0, 0.0  ;;  %v920_v0 = vld [vmem:[%s1655_s5 + $0x90] sm:$0xff]  ;;  %1210 = vmatpush.msrb.mxu2 %v904_v63  ;;  %951 = vmatpush.msra.mxu0 %v904_v63 }
  0xb5   : > { %v517_v4 = vmax.f32 %v473_v1, 0.0  ;;  %1226 = vmatpush.msrb.mxu3 %v920_v0  ;;  %1016 = vmatpush.msra.mxu1 %v920_v0 }
  0xb6   : > { %638 = vmatmul.f32.gmra.mxu2 %v516_v3  ;;  %768 = vmatmul.f32.gmra.mxu0 %v516_v3 }
  0xb7   : > { %703 = vmatmul.f32.gmra.mxu3 %v517_v4  ;;  %833 = vmatmul.f32.gmra.mxu1 %v517_v4 }
  0xb9   : > { %v410_v6 = vpop.f32.mrf.mxu0 }
  0xba   : > { %v475_v7 = vpop.f32.mrf.mxu1  ;;  %v411_v8 = vadd.f32 %v410_v6, %v1438_v27 }
  0xbb   : > { %v476_v9 = vadd.f32 %v475_v7, %v1440_v28  ;;  %v919_v7 = vld [vmem:[%s1655_s5 + $0x88] sm:$0xff] }
  0xbc   : > { %v518_v10 = vmax.f32 %v411_v8, 0.0  ;;  %1017 = vmatpush.msra.mxu1 %v919_v7  ;;  %v903_v8 = vld [vmem:[%s1655_s5 + $0x8] sm:$0xff]  ;;  %1227 = vmatpush.msrb.mxu3 %v919_v7 }
  0xbd   : > { %v519_v11 = vmax.f32 %v476_v9, 0.0  ;;  %v918_v9 = vld [vmem:[%s1655_s5 + $0x80] sm:$0xff]  ;;  %1211 = vmatpush.msrb.mxu2 %v903_v8  ;;  %952 = vmatpush.msra.mxu0 %v903_v8 }
  0xbe   : > { %641 = vmatmul.f32.gmra.mxu2 %v518_v10  ;;  %771 = vmatmul.f32.gmra.mxu0 %v518_v10 }
  0xbf   : > { %706 = vmatmul.f32.gmra.mxu3 %v519_v11  ;;  %836 = vmatmul.f32.gmra.mxu1 %v519_v11 }
  0xc0   : > { %1018 = vmatpush.msra.mxu1 %v918_v9  ;;  %1228 = vmatpush.msrb.mxu3 %v918_v9 }
  0xc1   : > { %v413_v14 = vpop.f32.mrf.mxu0 }
  0xc2   : > { %v478_v15 = vpop.f32.mrf.mxu1  ;;  %v414_v16 = vadd.f32 %v413_v14, %v1438_v27 }
  0xc3   : > { %v479_v17 = vadd.f32 %v478_v15, %v1440_v28 }
  0xc4   : > { %v520_v18 = vmax.f32 %v414_v16, 0.0  ;;  %v902_v16 = vld [vmem:[%s1655_s5] sm:$0xff] }
  0xc5   : > { %v521_v19 = vmax.f32 %v479_v17, 0.0  ;;  %953 = vmatpush.msra.mxu0 %v902_v16  ;;  %1212 = vmatpush.msrb.mxu2 %v902_v16 }
  0xc6   : > { %644 = vmatmul.f32.gmra.mxu2 %v520_v18  ;;  %774 = vmatmul.f32.gmra.mxu0 %v520_v18 }
  0xc7   : > { %709 = vmatmul.f32.gmra.mxu3 %v521_v19  ;;  %839 = vmatmul.f32.gmra.mxu1 %v521_v19 }
  0xc9   : > { %v416_v22 = vpop.f32.mrf.mxu0 }
  0xca   : > { %v481_v23 = vpop.f32.mrf.mxu1  ;;  %v417_v24 = vadd.f32 %v416_v22, %v1438_v27 }
  0xcb   : > { %v482_v25 = vadd.f32 %v481_v23, %v1440_v28 }
  0xcc   : > { %v522_v26 = vmax.f32 %v417_v24, 0.0 }
  0xcd   : > { %v523_v29 = vmax.f32 %v482_v25, 0.0 }
  0xce   : > { %647 = vmatmul.f32.gmra.mxu2 %v522_v26  ;;  %777 = vmatmul.f32.gmra.mxu0 %v522_v26 }
  0xcf   : > { %712 = vmatmul.f32.gmra.mxu3 %v523_v29  ;;  %842 = vmatmul.f32.gmra.mxu1 %v523_v29 }
  0xd1   : > { %v419_v32 = vpop.f32.mrf.mxu0 }
  0xd2   : > { %v484_v33 = vpop.f32.mrf.mxu1  ;;  %v420_v34 = vadd.f32 %v419_v32, %v1438_v27  ;;  %v1567_v32 = vperm.slane %v604_v31, 1 }
  0xd3   : > { %v485_v35 = vadd.f32 %v484_v33, %v1440_v28 }
  0xd4   : > { %v524_v36 = vmax.f32 %v420_v34, 0.0 }
  0xd5   : > { %v525_v37 = vmax.f32 %v485_v35, 0.0 }
  0xd6   : > { %650 = vmatmul.f32.gmra.mxu2 %v524_v36  ;;  %780 = vmatmul.f32.gmra.mxu0 %v524_v36 }
  0xd7   : > { %715 = vmatmul.f32.gmra.mxu3 %v525_v37  ;;  %845 = vmatmul.f32.gmra.mxu1 %v525_v37 }
  0xd9   : > { %v422_v40 = vpop.f32.mrf.mxu0 }
  0xda   : > { %v487_v41 = vpop.f32.mrf.mxu1  ;;  %v423_v42 = vadd.f32 %v422_v40, %v1438_v27 }
  0xdb   : > { %v488_v43 = vadd.f32 %v487_v41, %v1440_v28 }
  0xdc   : > { %v526_v44 = vmax.f32 %v423_v42, 0.0 }
  0xdd   : > { %v527_v45 = vmax.f32 %v488_v43, 0.0 }
  0xde   : > { %653 = vmatmul.f32.gmra.mxu2 %v526_v44  ;;  %783 = vmatmul.f32.gmra.mxu0 %v526_v44 }
  0xdf   : > { %718 = vmatmul.f32.gmra.mxu3 %v527_v45  ;;  %848 = vmatmul.f32.gmra.mxu1 %v527_v45 }
  0xe1   : > { %v425_v48 = vpop.f32.mrf.mxu0 }
  0xe2   : > { %v490_v49 = vpop.f32.mrf.mxu1  ;;  %v426_v50 = vadd.f32 %v425_v48, %v1438_v27 }
  0xe3   : > { %v491_v51 = vadd.f32 %v490_v49, %v1440_v28 }
  0xe4   : > { %v528_v52 = vmax.f32 %v426_v50, 0.0 }
  0xe5   : > { %v529_v53 = vmax.f32 %v491_v51, 0.0 }
  0xe6   : > { %656 = vmatmul.f32.gmra.mxu2 %v528_v52  ;;  %786 = vmatmul.f32.gmra.mxu0 %v528_v52 }
  0xe7   : > { %721 = vmatmul.f32.gmra.mxu3 %v529_v53  ;;  %851 = vmatmul.f32.gmra.mxu1 %v529_v53 }
  0xe9   : > { %v428_v56 = vpop.f32.mrf.mxu0 }
  0xea   : > { %v493_v57 = vpop.f32.mrf.mxu1  ;;  %v429_v58 = vadd.f32 %v428_v56, %v1438_v27 }
  0xeb   : > { %v494_v59 = vadd.f32 %v493_v57, %v1440_v28 }
  0xec   : > { %v530_v60 = vmax.f32 %v429_v58, 0.0 }
  0xed   : > { %v531_v61 = vmax.f32 %v494_v59, 0.0 }
  0xee   : > { %659 = vmatmul.f32.gmra.mxu2 %v530_v60  ;;  %789 = vmatmul.f32.gmra.mxu0 %v530_v60 }
  0xef   : > { %724 = vmatmul.f32.gmra.mxu3 %v531_v61  ;;  %854 = vmatmul.f32.gmra.mxu1 %v531_v61 }
  0xf1   : > { %v431_v1 = vpop.f32.mrf.mxu0 }
  0xf2   : > { %v496_v2 = vpop.f32.mrf.mxu1  ;;  %v432_v3 = vadd.f32 %v431_v1, %v1438_v27 }
  0xf3   : > { %v497_v4 = vadd.f32 %v496_v2, %v1440_v28 }
  0xf4   : > { %v532_v5 = vmax.f32 %v432_v3, 0.0 }
  0xf5   : > { %v533_v6 = vmax.f32 %v497_v4, 0.0 }
  0xf6   : > { %662 = vmatmul.f32.gmra.mxu2 %v532_v5  ;;  %792 = vmatmul.f32.gmra.mxu0 %v532_v5 }
  0xf7   : > { %727 = vmatmul.f32.gmra.mxu3 %v533_v6  ;;  %857 = vmatmul.f32.gmra.mxu1 %v533_v6 }
  0xf9   : > { %v434_v10 = vpop.f32.mrf.mxu0 }
  0xfa   : > { %v499_v11 = vpop.f32.mrf.mxu1  ;;  %v435_v12 = vadd.f32 %v434_v10, %v1438_v27 }
  0xfb   : > { %v500_v13 = vadd.f32 %v499_v11, %v1440_v28 }
  0xfc   : > { %v534_v14 = vmax.f32 %v435_v12, 0.0 }
  0xfd   : > { %v535_v15 = vmax.f32 %v500_v13, 0.0 }
  0xfe   : > { %665 = vmatmul.f32.gmra.mxu2 %v534_v14  ;;  %795 = vmatmul.f32.gmra.mxu0 %v534_v14 }
  0xff   : > { %730 = vmatmul.f32.gmra.mxu3 %v535_v15  ;;  %860 = vmatmul.f32.gmra.mxu1 %v535_v15 }
 0x101   : > { %v437_v17 = vpop.f32.mrf.mxu0 }
 0x102   : > { %v502_v18 = vpop.f32.mrf.mxu1  ;;  %v438_v19 = vadd.f32 %v437_v17, %v1438_v27 }
 0x103   : > { %v503_v20 = vadd.f32 %v502_v18, %v1440_v28 }
 0x104   : > { %v536_v21 = vmax.f32 %v438_v19, 0.0 }
 0x105   : > { %v537_v22 = vmax.f32 %v503_v20, 0.0 }
 0x106   : > { %668 = vmatmul.f32.gmra.mxu2 %v536_v21  ;;  %798 = vmatmul.f32.gmra.mxu0 %v536_v21 }
 0x107   : > { %733 = vmatmul.f32.gmra.mxu3 %v537_v22  ;;  %863 = vmatmul.f32.gmra.mxu1 %v537_v22 }
 0x109   : > { %v440_v23 = vpop.f32.mrf.mxu0 }
 0x10a   : > { %v505_v24 = vpop.f32.mrf.mxu1  ;;  %v441_v25 = vadd.f32 %v440_v23, %v1438_v27  ;;  %v1570_v27 = vperm.slane %v604_v31, 0 }
 0x10b   : > { %v506_v26 = vadd.f32 %v505_v24, %v1440_v28 }
 0x10c   : > { %v538_v29 = vmax.f32 %v441_v25, 0.0 }
 0x10d   : > { %v539_v30 = vmax.f32 %v506_v26, 0.0 }
 0x10e   : > { %671 = vmatmul.f32.gmra.mxu2 %v538_v29  ;;  %801 = vmatmul.f32.gmra.mxu0 %v538_v29 }
 0x10f   : > { %736 = vmatmul.f32.gmra.mxu3 %v539_v30  ;;  %866 = vmatmul.f32.gmra.mxu1 %v539_v30 }
 0x113   : > { %v757_v33 = vpop.f32.mrf.mxu0 }
 0x114   : > { %v758_v34 = vadd.f32 %v757_v33, %v1567_v32  ;;  %v822_v35 = vpop.f32.mrf.mxu1 }
 0x116   : > { %v823_v36 = vadd.f32 %v822_v35, %v758_v34 }
 0x118   : > { %v871_v28 = vmax.f32 %v823_v36, 0.0 }
 0x119   : > { %v627_v37 = vpop.f32.mrf.mxu2 }
 0x11a   : > { %v628_v38 = vadd.f32 %v627_v37, %v1570_v27  ;;  %1019 = vmatmul.f32.vlgmr.msra.gmra.mxu1 %v871_v28  ;;  %v692_v39 = vpop.f32.mrf.mxu3 }
 0x11b   : > { %v760_v40 = vpop.f32.mrf.mxu0 }
 0x11c   : > { %v693_v41 = vadd.f32 %v692_v39, %v628_v38  ;;  %v761_v42 = vadd.f32 %v760_v40, %v1567_v32  ;;  %v825_v43 = vpop.f32.mrf.mxu1 }
 0x11e   : > { %v870_v44 = vmax.f32 %v693_v41, 0.0  ;;  %v826_v45 = vadd.f32 %v825_v43, %v761_v42 }
 0x120   : > { %v873_v46 = vmax.f32 %v826_v45, 0.0  ;;  %954 = vmatmul.f32.vlgmr.msra.gmra.mxu0 %v870_v44 }
 0x121   : > { %v630_v47 = vpop.f32.mrf.mxu2 }
 0x122   : > { %v631_v48 = vadd.f32 %v630_v47, %v1570_v27  ;;  %1022 = vmatmul.f32.vlgmr.msrb.gmra.mxu3 %v873_v46  ;;  %v695_v49 = vpop.f32.mrf.mxu3 }
 0x123   : > { %v763_v50 = vpop.f32.mrf.mxu0 }
 0x124   : > { %v696_v51 = vadd.f32 %v695_v49, %v631_v48  ;;  %v764_v52 = vadd.f32 %v763_v50, %v1567_v32  ;;  %v828_v53 = vpop.f32.mrf.mxu1 }
 0x126   : > { %v872_v54 = vmax.f32 %v696_v51, 0.0  ;;  %v829_v55 = vadd.f32 %v828_v53, %v764_v52 }
 0x128   : > { %v875_v56 = vmax.f32 %v829_v55, 0.0  ;;  %957 = vmatmul.f32.vlgmr.msrb.gmra.mxu2 %v872_v54 }
 0x129   : > { %v633_v57 = vpop.f32.mrf.mxu2 }
 0x12a   : > { %v634_v58 = vadd.f32 %v633_v57, %v1570_v27  ;;  %1025 = vmatmul.f32.gmra.mxu3 %v875_v56  ;;  %v698_v59 = vpop.f32.mrf.mxu3 }
 0x12b   : > { %v766_v60 = vpop.f32.mrf.mxu0 }
 0x12c   : > { %v699_v61 = vadd.f32 %v698_v59, %v634_v58  ;;  %v767_v62 = vadd.f32 %v766_v60, %v1567_v32  ;;  %v831_v63 = vpop.f32.mrf.mxu1 }
 0x12e   : > { %v832_v0 = vadd.f32 %v831_v63, %v767_v62  ;;  %v874_v1 = vmax.f32 %v699_v61, 0.0 }
 0x130   : > { %v877_v2 = vmax.f32 %v832_v0, 0.0  ;;  %960 = vmatmul.f32.gmra.mxu2 %v874_v1 }
 0x131   : > { %v636_v3 = vpop.f32.mrf.mxu2 }
 0x132   : > { %v637_v4 = vadd.f32 %v636_v3, %v1570_v27  ;;  %1028 = vmatmul.f32.gmra.mxu3 %v877_v2  ;;  %v701_v5 = vpop.f32.mrf.mxu3 }
 0x133   : > { %v769_v6 = vpop.f32.mrf.mxu0 }
 0x134   : > { %v702_v7 = vadd.f32 %v701_v5, %v637_v4  ;;  %v770_v8 = vadd.f32 %v769_v6, %v1567_v32  ;;  %v834_v9 = vpop.f32.mrf.mxu1 }
 0x136   : > { %v835_v10 = vadd.f32 %v834_v9, %v770_v8  ;;  %v876_v11 = vmax.f32 %v702_v7, 0.0 }
 0x138   : > { %v879_v12 = vmax.f32 %v835_v10, 0.0  ;;  %963 = vmatmul.f32.gmra.mxu2 %v876_v11 }
 0x139   : > { %v639_v13 = vpop.f32.mrf.mxu2 }
 0x13a   : > { %v640_v14 = vadd.f32 %v639_v13, %v1570_v27  ;;  %1031 = vmatmul.f32.gmra.mxu3 %v879_v12  ;;  %v704_v15 = vpop.f32.mrf.mxu3 }
 0x13b   : > { %v772_v16 = vpop.f32.mrf.mxu0 }
 0x13c   : > { %v705_v17 = vadd.f32 %v704_v15, %v640_v14  ;;  %v773_v18 = vadd.f32 %v772_v16, %v1567_v32  ;;  %v837_v19 = vpop.f32.mrf.mxu1 }
 0x13e   : > { %v838_v20 = vadd.f32 %v837_v19, %v773_v18  ;;  %v878_v21 = vmax.f32 %v705_v17, 0.0 }
 0x140   : > { %v881_v22 = vmax.f32 %v838_v20, 0.0  ;;  %966 = vmatmul.f32.gmra.mxu2 %v878_v21 }
 0x141   : > { %v642_v23 = vpop.f32.mrf.mxu2 }
 0x142   : > { %v643_v24 = vadd.f32 %v642_v23, %v1570_v27  ;;  %1034 = vmatmul.f32.gmra.mxu3 %v881_v22  ;;  %v707_v25 = vpop.f32.mrf.mxu3 }
 0x143   : > { %v775_v26 = vpop.f32.mrf.mxu0 }
 0x144   : > { %v708_v29 = vadd.f32 %v707_v25, %v643_v24  ;;  %v776_v30 = vadd.f32 %v775_v26, %v1567_v32  ;;  %v840_v31 = vpop.f32.mrf.mxu1 }
 0x146   : > { %v841_v33 = vadd.f32 %v840_v31, %v776_v30  ;;  %v880_v34 = vmax.f32 %v708_v29, 0.0 }
 0x148   : > { %v883_v35 = vmax.f32 %v841_v33, 0.0  ;;  %969 = vmatmul.f32.gmra.mxu2 %v880_v34 }
 0x149   : > { %v645_v36 = vpop.f32.mrf.mxu2 }
 0x14a   : > { %v646_v28 = vadd.f32 %v645_v36, %v1570_v27  ;;  %1037 = vmatmul.f32.gmra.mxu3 %v883_v35  ;;  %v710_v37 = vpop.f32.mrf.mxu3 }
 0x14b   : > { %v778_v38 = vpop.f32.mrf.mxu0 }
 0x14c   : > { %v711_v39 = vadd.f32 %v710_v37, %v646_v28  ;;  %v779_v40 = vadd.f32 %v778_v38, %v1567_v32  ;;  %v843_v41 = vpop.f32.mrf.mxu1 }
 0x14e   : > { %v844_v42 = vadd.f32 %v843_v41, %v779_v40  ;;  %v882_v43 = vmax.f32 %v711_v39, 0.0 }
 0x150   : > { %v885_v44 = vmax.f32 %v844_v42, 0.0  ;;  %972 = vmatmul.f32.gmra.mxu2 %v882_v43 }
 0x151   : > { %v648_v45 = vpop.f32.mrf.mxu2 }
 0x152   : > { %v649_v46 = vadd.f32 %v648_v45, %v1570_v27  ;;  %1040 = vmatmul.f32.gmra.mxu3 %v885_v44  ;;  %v713_v47 = vpop.f32.mrf.mxu3 }
 0x153   : > { %v781_v48 = vpop.f32.mrf.mxu0 }
 0x154   : > { %v714_v49 = vadd.f32 %v713_v47, %v649_v46  ;;  %v782_v50 = vadd.f32 %v781_v48, %v1567_v32  ;;  %v846_v51 = vpop.f32.mrf.mxu1 }
 0x156   : > { %v884_v52 = vmax.f32 %v714_v49, 0.0  ;;  %v847_v53 = vadd.f32 %v846_v51, %v782_v50 }
 0x158   : > { %v887_v54 = vmax.f32 %v847_v53, 0.0  ;;  %975 = vmatmul.f32.gmra.mxu2 %v884_v52 }
 0x159   : > { %v651_v55 = vpop.f32.mrf.mxu2 }
 0x15a   : > { %v652_v56 = vadd.f32 %v651_v55, %v1570_v27  ;;  %1043 = vmatmul.f32.gmra.mxu3 %v887_v54  ;;  %v716_v57 = vpop.f32.mrf.mxu3 }
 0x15b   : > { %v784_v58 = vpop.f32.mrf.mxu0 }
 0x15c   : > { %v717_v59 = vadd.f32 %v716_v57, %v652_v56  ;;  %v785_v60 = vadd.f32 %v784_v58, %v1567_v32  ;;  %v849_v61 = vpop.f32.mrf.mxu1 }
 0x15e   : > { %v886_v62 = vmax.f32 %v717_v59, 0.0  ;;  %v850_v63 = vadd.f32 %v849_v61, %v785_v60 }
 0x160   : > { %v889_v0 = vmax.f32 %v850_v63, 0.0  ;;  %978 = vmatmul.f32.gmra.mxu2 %v886_v62 }
 0x161   : > { %v654_v1 = vpop.f32.mrf.mxu2 }
 0x162   : > { %v655_v2 = vadd.f32 %v654_v1, %v1570_v27  ;;  %1046 = vmatmul.f32.gmra.mxu3 %v889_v0  ;;  %v719_v3 = vpop.f32.mrf.mxu3 }
 0x163   : > { %v787_v4 = vpop.f32.mrf.mxu0 }
 0x164   : > { %v720_v5 = vadd.f32 %v719_v3, %v655_v2  ;;  %v788_v6 = vadd.f32 %v787_v4, %v1567_v32  ;;  %v852_v7 = vpop.f32.mrf.mxu1  ;;  %v1606_v4 = vld [vmem:[%s1656_s6] ss:$0 sm:$0xff] }
 0x166   : > { %v888_v8 = vmax.f32 %v720_v5, 0.0  ;;  %v853_v9 = vadd.f32 %v852_v7, %v788_v6 }
 0x168   : > { %v891_v10 = vmax.f32 %v853_v9, 0.0  ;;  %981 = vmatmul.f32.gmra.mxu2 %v888_v8 }
 0x169   : > { %v657_v11 = vpop.f32.mrf.mxu2 }
 0x16a   : > { %v658_v12 = vadd.f32 %v657_v11, %v1570_v27  ;;  %1049 = vmatmul.f32.gmra.mxu3 %v891_v10  ;;  %v722_v13 = vpop.f32.mrf.mxu3 }
 0x16b   : > { %v790_v14 = vpop.f32.mrf.mxu0 }
 0x16c   : > { %v723_v15 = vadd.f32 %v722_v13, %v658_v12  ;;  %v791_v16 = vadd.f32 %v790_v14, %v1567_v32  ;;  %v855_v17 = vpop.f32.mrf.mxu1 }
 0x16e   : > { %v890_v18 = vmax.f32 %v723_v15, 0.0  ;;  %v856_v19 = vadd.f32 %v855_v17, %v791_v16 }
 0x170   : > { %v893_v20 = vmax.f32 %v856_v19, 0.0  ;;  %984 = vmatmul.f32.gmra.mxu2 %v890_v18 }
 0x171   : > { %v660_v21 = vpop.f32.mrf.mxu2 }
 0x172   : > { %v661_v22 = vadd.f32 %v660_v21, %v1570_v27  ;;  %1052 = vmatmul.f32.gmra.mxu3 %v893_v20  ;;  %v725_v23 = vpop.f32.mrf.mxu3 }
 0x173   : > { %v793_v24 = vpop.f32.mrf.mxu0 }
 0x174   : > { %v726_v25 = vadd.f32 %v725_v23, %v661_v22  ;;  %v794_v26 = vadd.f32 %v793_v24, %v1567_v32  ;;  %v858_v29 = vpop.f32.mrf.mxu1 }
 0x176   : > { %v892_v30 = vmax.f32 %v726_v25, 0.0  ;;  %v859_v31 = vadd.f32 %v858_v29, %v794_v26 }
 0x178   : > { %v895_v33 = vmax.f32 %v859_v31, 0.0  ;;  %987 = vmatmul.f32.gmra.mxu2 %v892_v30 }
 0x179   : > { %v663_v34 = vpop.f32.mrf.mxu2 }
 0x17a   : > { %v664_v35 = vadd.f32 %v663_v34, %v1570_v27  ;;  %1055 = vmatmul.f32.gmra.mxu3 %v895_v33  ;;  %v728_v36 = vpop.f32.mrf.mxu3 }
 0x17b   : > { %v796_v28 = vpop.f32.mrf.mxu0 }
 0x17c   : > { %v729_v37 = vadd.f32 %v728_v36, %v664_v35  ;;  %v797_v38 = vadd.f32 %v796_v28, %v1567_v32  ;;  %v861_v39 = vpop.f32.mrf.mxu1 }
 0x17e   : > { %v894_v40 = vmax.f32 %v729_v37, 0.0  ;;  %v862_v41 = vadd.f32 %v861_v39, %v797_v38 }
 0x180   : > { %v897_v42 = vmax.f32 %v862_v41, 0.0  ;;  %990 = vmatmul.f32.gmra.mxu2 %v894_v40 }
 0x181   : > { %v666_v43 = vpop.f32.mrf.mxu2 }
 0x182   : > { %v667_v44 = vadd.f32 %v666_v43, %v1570_v27  ;;  %1058 = vmatmul.f32.gmra.mxu3 %v897_v42  ;;  %v731_v45 = vpop.f32.mrf.mxu3 }
 0x183   : > { %v799_v46 = vpop.f32.mrf.mxu0 }
 0x184   : > { %v732_v47 = vadd.f32 %v731_v45, %v667_v44  ;;  %v800_v48 = vadd.f32 %v799_v46, %v1567_v32  ;;  %v864_v49 = vpop.f32.mrf.mxu1 }
 0x186   : > { %v896_v50 = vmax.f32 %v732_v47, 0.0  ;;  %v865_v51 = vadd.f32 %v864_v49, %v800_v48 }
 0x188   : > { %v899_v52 = vmax.f32 %v865_v51, 0.0  ;;  %993 = vmatmul.f32.gmra.mxu2 %v896_v50 }
 0x189   : > { %v669_v53 = vpop.f32.mrf.mxu2 }
 0x18a   : > { %v670_v54 = vadd.f32 %v669_v53, %v1570_v27  ;;  %1061 = vmatmul.f32.gmra.mxu3 %v899_v52  ;;  %v734_v55 = vpop.f32.mrf.mxu3 }
 0x18b   : > { %v802_v56 = vpop.f32.mrf.mxu0 }
 0x18c   : > { %v735_v57 = vadd.f32 %v734_v55, %v670_v54  ;;  %v803_v58 = vadd.f32 %v802_v56, %v1567_v32  ;;  %v867_v59 = vpop.f32.mrf.mxu1 }
 0x18e   : > { %v898_v60 = vmax.f32 %v735_v57, 0.0  ;;  %v868_v61 = vadd.f32 %v867_v59, %v803_v58 }
 0x190   : > { %v901_v62 = vmax.f32 %v868_v61, 0.0  ;;  %996 = vmatmul.f32.gmra.mxu2 %v898_v60 }
 0x191   : > { %v672_v63 = vpop.f32.mrf.mxu2 }
 0x192   : > { %v673_v0 = vadd.f32 %v672_v63, %v1570_v27  ;;  %1064 = vmatmul.f32.gmra.mxu3 %v901_v62  ;;  %v737_v1 = vpop.f32.mrf.mxu3 }
 0x194   : > { %v738_v2 = vadd.f32 %v737_v1, %v673_v0 }
 0x196   : > { %v900_v3 = vmax.f32 %v738_v2, 0.0 }
 0x197   : > { %v1020_v27 = vpop.f32.mrf.mxu1 }
 0x198   : > { %999 = vmatmul.f32.gmra.mxu2 %v900_v3 }
 0x19d   : > { %v955_v32 = vpop.f32.mrf.mxu0 }
 0x19e   : > { %v956_v5 = vadd.f32 %v1606_v4, %v955_v32 }
 0x1a0   : > { %v1021_v6 = vadd.f32 %v1020_v27, %v956_v5 }
 0x1a2   : > { %1068 = vst [vmem:[%s1614_s23] sm:$0xff] %v1021_v6 }
 0x1a5   : > { %v1023_v7 = vpop.f32.mrf.mxu3 }
 0x1ab   : > { %v958_v8 = vpop.f32.mrf.mxu2 }
 0x1ac   : > { %v959_v9 = vadd.f32 %v1606_v4, %v958_v8 }
 0x1ad   : > { %v1026_v10 = vpop.f32.mrf.mxu3 }
 0x1ae   : > { %v1024_v11 = vadd.f32 %v1023_v7, %v959_v9 }
 0x1b0   : > { %1069 = vst [vmem:[%s1614_s23 + $0x8] sm:$0xff] %v1024_v11 }
 0x1b3   : > { %v961_v12 = vpop.f32.mrf.mxu2 }
 0x1b4   : > { %v962_v13 = vadd.f32 %v1606_v4, %v961_v12 }
 0x1b5   : > { %v1029_v14 = vpop.f32.mrf.mxu3 }
 0x1b6   : > { %v1027_v15 = vadd.f32 %v1026_v10, %v962_v13 }
 0x1b8   : > { %1070 = vst [vmem:[%s1614_s23 + $0x10] sm:$0xff] %v1027_v15 }
 0x1bb   : > { %v964_v16 = vpop.f32.mrf.mxu2 }
 0x1bc   : > { %v965_v17 = vadd.f32 %v1606_v4, %v964_v16 }
 0x1bd   : > { %v1032_v18 = vpop.f32.mrf.mxu3 }
 0x1be   : > { %v1030_v19 = vadd.f32 %v1029_v14, %v965_v17 }
 0x1c0   : > { %1071 = vst [vmem:[%s1614_s23 + $0x18] sm:$0xff] %v1030_v19 }
 0x1c3   : > { %v967_v20 = vpop.f32.mrf.mxu2 }
 0x1c4   : > { %v968_v21 = vadd.f32 %v1606_v4, %v967_v20 }
 0x1c5   : > { %v1035_v22 = vpop.f32.mrf.mxu3 }
 0x1c6   : > { %v1033_v23 = vadd.f32 %v1032_v18, %v968_v21 }
 0x1c8   : > { %1072 = vst [vmem:[%s1614_s23 + $0x20] sm:$0xff] %v1033_v23 }
 0x1cb   : > { %v970_v24 = vpop.f32.mrf.mxu2 }
 0x1cc   : > { %v971_v25 = vadd.f32 %v1606_v4, %v970_v24 }
 0x1cd   : > { %v1038_v26 = vpop.f32.mrf.mxu3 }
 0x1ce   : > { %v1036_v29 = vadd.f32 %v1035_v22, %v971_v25 }
 0x1d0   : > { %1073 = vst [vmem:[%s1614_s23 + $0x28] sm:$0xff] %v1036_v29 }
 0x1d3   : > { %v973_v30 = vpop.f32.mrf.mxu2 }
 0x1d4   : > { %v974_v31 = vadd.f32 %v1606_v4, %v973_v30 }
 0x1d5   : > { %v1041_v33 = vpop.f32.mrf.mxu3 }
 0x1d6   : > { %v1039_v34 = vadd.f32 %v1038_v26, %v974_v31 }
 0x1d8   : > { %1074 = vst [vmem:[%s1614_s23 + $0x30] sm:$0xff] %v1039_v34 }
 0x1db   : > { %v976_v35 = vpop.f32.mrf.mxu2 }
 0x1dc   : > { %v977_v36 = vadd.f32 %v1606_v4, %v976_v35 }
 0x1dd   : > { %v1044_v28 = vpop.f32.mrf.mxu3 }
 0x1de   : > { %v1042_v37 = vadd.f32 %v1041_v33, %v977_v36 }
 0x1e0   : > { %1075 = vst [vmem:[%s1614_s23 + $0x38] sm:$0xff] %v1042_v37 }
 0x1e3   : > { %v979_v38 = vpop.f32.mrf.mxu2 }
 0x1e4   : > { %v980_v39 = vadd.f32 %v1606_v4, %v979_v38 }
 0x1e5   : > { %v1047_v40 = vpop.f32.mrf.mxu3 }
 0x1e6   : > { %v1045_v41 = vadd.f32 %v1044_v28, %v980_v39 }
 0x1e8   : > { %1076 = vst [vmem:[%s1614_s23 + $0x40] sm:$0xff] %v1045_v41 }
 0x1eb   : > { %v982_v42 = vpop.f32.mrf.mxu2 }
 0x1ec   : > { %v983_v43 = vadd.f32 %v1606_v4, %v982_v42 }
 0x1ed   : > { %v1050_v44 = vpop.f32.mrf.mxu3 }
 0x1ee   : > { %v1048_v45 = vadd.f32 %v1047_v40, %v983_v43 }
 0x1f0   : > { %1077 = vst [vmem:[%s1614_s23 + $0x48] sm:$0xff] %v1048_v45 }
 0x1f3   : > { %v985_v46 = vpop.f32.mrf.mxu2 }
 0x1f4   : > { %v986_v47 = vadd.f32 %v1606_v4, %v985_v46 }
 0x1f5   : > { %v1053_v48 = vpop.f32.mrf.mxu3 }
 0x1f6   : > { %v1051_v49 = vadd.f32 %v1050_v44, %v986_v47 }
 0x1f8   : > { %1078 = vst [vmem:[%s1614_s23 + $0x50] sm:$0xff] %v1051_v49 }
 0x1fb   : > { %v988_v50 = vpop.f32.mrf.mxu2 }
 0x1fc   : > { %v989_v51 = vadd.f32 %v1606_v4, %v988_v50 }
 0x1fd   : > { %v1056_v53 = vpop.f32.mrf.mxu3 }
 0x1fe   : > { %v1054_v52 = vadd.f32 %v1053_v48, %v989_v51 }
 0x200   : > { %1079 = vst [vmem:[%s1614_s23 + $0x58] sm:$0xff] %v1054_v52 }
 0x203   : > { %v991_v54 = vpop.f32.mrf.mxu2 }
 0x204   : > { %v992_v55 = vadd.f32 %v1606_v4, %v991_v54 }
 0x205   : > { %v1059_v57 = vpop.f32.mrf.mxu3 }
 0x206   : > { %v1057_v56 = vadd.f32 %v1056_v53, %v992_v55 }
 0x208   : > { %1080 = vst [vmem:[%s1614_s23 + $0x60] sm:$0xff] %v1057_v56 }
 0x20b   : > { %v994_v58 = vpop.f32.mrf.mxu2 }
 0x20c   : > { %v995_v59 = vadd.f32 %v1606_v4, %v994_v58 }
 0x20d   : > { %v1062_v61 = vpop.f32.mrf.mxu3 }
 0x20e   : > { %v1060_v60 = vadd.f32 %v1059_v57, %v995_v59 }
 0x210   : > { %1081 = vst [vmem:[%s1614_s23 + $0x68] sm:$0xff] %v1060_v60 }
 0x213   : > { %v997_v62 = vpop.f32.mrf.mxu2 }
 0x214   : > { %v998_v63 = vadd.f32 %v1606_v4, %v997_v62 }
 0x215   : > { %v1065_v3 = vpop.f32.mrf.mxu3 }
 0x216   : > { %v1063_v0 = vadd.f32 %v1062_v61, %v998_v63 }
 0x218   : > { %1082 = vst [vmem:[%s1614_s23 + $0x70] sm:$0xff] %v1063_v0 }
 0x21b   : > { %v1000_v1 = vpop.f32.mrf.mxu2 }
 0x21c   : > { %v1001_v2 = vadd.f32 %v1606_v4, %v1000_v1 }
 0x21e   : > { %v1066_v32 = vadd.f32 %v1065_v3, %v1001_v2 }
 0x220   : > { %1083 = vst [vmem:[%s1614_s23 + $0x78] sm:$0xff] %v1066_v32 }
 0x221 PF: > { %s18_s24 = sadd.s32 1, %s1291_s24  }
 0x222   : > { %p15_p7 = scmp.ge.s32.totalorder %s18_s24, 4  }
 0x224   :  { %17 = sbr.rel (!%p15_p7) target bundleno = 1 (0x1), region = 83 }
 0x229   :  { %1106 = vsyncpa [#allocation3], 1 }
 0x22a   :  { %1108 = vsyncpa [#allocation3 + $0x1], 1 }

</bundles_post_ra>
